<compile_context>
chip_gen: v6e
topology: v6e:2x2x1
jax: 0.10.0
libtpu: 0.0.40
codegen_flags: <defaults>
</compile_context>

<pallas_src>
import functools

import jax
import jax.numpy as jnp
from jax.experimental import pallas as pl
from jax.experimental.pallas import tpu as pltpu

BN_EPS = 1e-5
LRELU_SLOPE = 0.2
LANE = 128                               # pad feature dims to multiples of the lane width


# --------------------------------------------------------------------------- VMEM budgets
def _vmem_capacity_bytes():
    """Physical VMEM per TensorCore (128 MiB on v5e/v6e, 64 MiB on v7x); falls back
    to a conservative 64 MiB if the query is unavailable."""
    try:
        info = pltpu.get_tpu_info()
        for attr in ("vmem_capacity_bytes", "vmem_size_bytes", "vmem_bytes"):
            v = getattr(info, attr, None)
            if v:
                return int(v)
    except Exception:
        pass
    return 64 * 1024 * 1024


_VMEM_CAP_BYTES = _vmem_capacity_bytes()
# Mosaic scoped-VMEM limit: leave headroom under the physical cap
# (96 MiB on 128 MiB parts, 48 MiB on 64 MiB parts).
_VMEM_LIMIT_BYTES = min(_VMEM_CAP_BYTES * 3 // 4, _VMEM_CAP_BYTES - 16 * 1024 * 1024)
# Everything-resident fused path allowed up to ~3/8 of physical VMEM
# (48 MiB on v5e/v6e, 24 MiB on v7x).
_FUSED_VMEM_BUDGET = _VMEM_CAP_BYTES * 3 // 8
# v7x-like parts (64 MiB VMEM, 2 TensorCores): the grid-less fused kernel runs on a
# single core, so keep it for genuinely small weight footprints only.
_SMALL_VMEM_PART = _VMEM_CAP_BYTES <= 64 * 1024 * 1024
_FUSED_WEIGHT_CAP_SMALL_VMEM = 4 * 1024 * 1024


# --------------------------------------------------------------------------- kernels
def _bn_lrelu(y, gamma, beta):
    """Train-mode BatchNorm1d (biased batch variance over the full batch) folded
    into a single per-feature scale/shift FMA, followed by LeakyReLU(0.2).
    y is f32 (B, H); gamma/beta are f32 (1, H)."""
    mean = jnp.mean(y, axis=0, keepdims=True)
    var = jnp.mean(jnp.square(y - mean), axis=0, keepdims=True)   # biased var (matches PyTorch normalization)
    scale = gamma * jax.lax.rsqrt(var + BN_EPS)                   # rsqrt -> EUP (free slot)
    shift = beta - mean * scale
    z = y * scale + shift                                         # one FMA per element
    return jnp.maximum(z, LRELU_SLOPE * z)                        # LeakyReLU, slope < 1


def _make_fused_mlp_kernel(nlayers):
    """Whole-MLP kernel.  refs = (x, [w, gamma, beta]*nlayers, w_out, b_out, out)."""
    def kernel(*refs):
        x_ref = refs[0]
        w_out_ref = refs[1 + 3 * nlayers]
        b_out_ref = refs[2 + 3 * nlayers]
        o_ref = refs[3 + 3 * nlayers]

        h = x_ref[...]                                            # compute dtype (f32 or bf16), no upcast
        for i in range(nlayers):
            w_ref, g_ref, b_ref = refs[1 + 3 * i: 4 + 3 * i]
            y = jnp.dot(h, w_ref[...], preferred_element_type=jnp.float32)   # MXU, f32 accumulate
            h = _bn_lrelu(y, g_ref[...], b_ref[...]).astype(x_ref.dtype)
        out = jnp.dot(h, w_out_ref[...], preferred_element_type=jnp.float32) + b_out_ref[...]
        o_ref[...] = out.astype(o_ref.dtype)
    return kernel


def _hidden_layer_tiled_kernel(x_ref, w_ref, g_ref, b_ref, o_ref):
    """One hidden layer, one output-feature tile.  Full batch per block so the
    BatchNorm statistics span the whole batch (per-feature stats => N-tiling is exact)."""
    y = jnp.dot(x_ref[...], w_ref[...], preferred_element_type=jnp.float32)
    o_ref[...] = _bn_lrelu(y, g_ref[...], b_ref[...]).astype(o_ref.dtype)


def _out_layer_tiled_kernel(x_ref, w_ref, b_ref, o_ref):
    y = jnp.dot(x_ref[...], w_ref[...], preferred_element_type=jnp.float32) + b_ref[...]
    o_ref[...] = y.astype(o_ref.dtype)


# --------------------------------------------------------------------------- wrappers
def _full_spec(shape):
    nd = len(shape)
    return pl.BlockSpec(shape, lambda: (0,) * nd)


def _fused_mlp(x, layers, w_out, b_out):
    """Single pallas_call for the entire MLP (everything resident in VMEM).
    For footprints above _FUSED_VMEM_BUDGET the caller falls back to the N-tiled
    per-layer path, whose grid pipelining overlaps weight DMA with compute."""
    nlayers = len(layers)
    b = x.shape[0]
    no_p = w_out.shape[1]

    inputs = [x]
    for (w, g, be) in layers:
        inputs += [w, g, be]
    inputs += [w_out, b_out]

    flops = 2 * b * sum(w.shape[0] * w.shape[1] for (w, _, _) in layers)
    flops += 2 * b * w_out.shape[0] * w_out.shape[1]
    transcendentals = sum(w.shape[1] for (w, _, _) in layers)     # one rsqrt per hidden feature
    bytes_accessed = sum(int(a.size) * a.dtype.itemsize for a in inputs) + b * no_p * 4

    return pl.pallas_call(
        _make_fused_mlp_kernel(nlayers),
        out_shape=jax.ShapeDtypeStruct((b, no_p), jnp.float32),
        in_specs=[_full_spec(a.shape) for a in inputs],
        out_specs=_full_spec((b, no_p)),
        compiler_params=pltpu.CompilerParams(vmem_limit_bytes=_VMEM_LIMIT_BYTES),
        cost_estimate=pl.CostEstimate(flops=int(flops),
                                      transcendentals=int(transcendentals),
                                      bytes_accessed=int(bytes_accessed)),
    )(*inputs)


def _pick_tile(n, k, b, itemsize, budget):
    """Largest lane-multiple output-feature tile whose (double-buffered) working set
    fits the VMEM budget.  Prefers >=2 grid steps when the layer is >=512 wide so the
    weight-tile DMA pipelines with compute and, on v7x, both TensorCores get work;
    never drops to 128 unless the layer itself is narrow or VMEM is very tight."""
    cands = [t for t in range(n, 0, -LANE) if n % t == 0]
    if n >= 4 * LANE:
        two_step = [t for t in cands if t <= n // 2]
        if two_step:
            cands = two_step
    for t in cands:
        need = 2 * k * t * itemsize          # weight tile, double-buffered by Pallas
        need += b * k * itemsize             # x resident across the grid
        need += 2 * b * t * 4                # output tile (f32 worst case), double-buffered
        need += 2 * b * t * 4                # f32 matmul / BN intermediates
        need += 4 * t * 4                    # gamma / beta (or bias) tiles
        if need <= budget:
            return t
    return cands[-1]


def _hidden_layer_tiled(x, w, gamma, beta):
    """Fallback path: grid over output-feature tiles; full batch + full K per block."""
    b, k = x.shape
    n = w.shape[1]
    tn = _pick_tile(n, k, b, w.dtype.itemsize, _VMEM_LIMIT_BYTES)
    bytes_accessed = (x.size * x.dtype.itemsize + w.size * w.dtype.itemsize
                      + gamma.size * gamma.dtype.itemsize + beta.size * beta.dtype.itemsize
                      + b * n * x.dtype.itemsize)
    return pl.pallas_call(
        _hidden_layer_tiled_kernel,
        out_shape=jax.ShapeDtypeStruct((b, n), x.dtype),
        grid_spec=pltpu.PrefetchScalarGridSpec(
            num_scalar_prefetch=0,
            grid=(n // tn,),
            in_specs=[pl.BlockSpec((b, k), lambda j: (0, 0)),     # x resident across the grid
                      pl.BlockSpec((k, tn), lambda j: (0, j)),    # weight tile, double-buffered
                      pl.BlockSpec((1, tn), lambda j: (0, j)),
                      pl.BlockSpec((1, tn), lambda j: (0, j))],
            out_specs=pl.BlockSpec((b, tn), lambda j: (0, j)),    # lane-dense output tile
        ),
        compiler_params=pltpu.CompilerParams(
            dimension_semantics=("parallel",),                    # shard across v7x's 2 TensorCores
            vmem_limit_bytes=_VMEM_LIMIT_BYTES),
        cost_estimate=pl.CostEstimate(flops=int(2 * b * k * n), transcendentals=int(n),
                                      bytes_accessed=int(bytes_accessed)),
    )(x, w, gamma, beta)


def _out_layer_tiled(x, w, bias):
    b, k = x.shape
    n = w.shape[1]
    tn = _pick_tile(n, k, b, w.dtype.itemsize, _VMEM_LIMIT_BYTES)
    bytes_accessed = (x.size * x.dtype.itemsize + w.size * w.dtype.itemsize
                      + bias.size * bias.dtype.itemsize + b * n * 4)
    return pl.pallas_call(
        _out_layer_tiled_kernel,
        out_shape=jax.ShapeDtypeStruct((b, n), jnp.float32),
        grid_spec=pltpu.PrefetchScalarGridSpec(
            num_scalar_prefetch=0,
            grid=(n // tn,),
            in_specs=[pl.BlockSpec((b, k), lambda j: (0, 0)),
                      pl.BlockSpec((k, tn), lambda j: (0, j)),
                      pl.BlockSpec((1, tn), lambda j: (0, j))],
            out_specs=pl.BlockSpec((b, tn), lambda j: (0, j)),
        ),
        compiler_params=pltpu.CompilerParams(
            dimension_semantics=("parallel",),
            vmem_limit_bytes=_VMEM_LIMIT_BYTES),
        cost_estimate=pl.CostEstimate(flops=int(2 * b * k * n), transcendentals=0,
                                      bytes_accessed=int(bytes_accessed)),
    )(x, w, bias)


# --------------------------------------------------------------------------- params
def _round_up(n, m):
    return ((n + m - 1) // m) * m


def _pad2(a, rows, cols):
    r, c = a.shape
    return jnp.pad(a, ((0, rows - r), (0, cols - c)))


def init_mlp_params(key, ni, no, nhidden, nlayers):
    """Deterministic synthetic init (PyTorch-like uniform(-1/sqrt(fan_in), 1/sqrt(fan_in))).
    Weights are stored as (in_features, out_features); gamma/beta are BN defaults."""
    params = {"layers": []}
    fan_in = ni
    for _ in range(nlayers):
        key, kw = jax.random.split(key)
        bound = 1.0 / (fan_in ** 0.5)
        w = jax.random.uniform(kw, (fan_in, nhidden), jnp.float32, -bound, bound)
        gamma = jnp.ones((1, nhidden), jnp.float32)
        beta = jnp.zeros((1, nhidden), jnp.float32)
        params["layers"].append((w, gamma, beta))
        fan_in = nhidden
    last_in = nhidden if nlayers > 0 else ni
    key, kw, kb = jax.random.split(key, 3)
    bound = 1.0 / (last_in ** 0.5)
    params["w_out"] = jax.random.uniform(kw, (last_in, no), jnp.float32, -bound, bound)
    params["b_out"] = jax.random.uniform(kb, (1, no), jnp.float32, -bound, bound)
    return params


def prepare_params(params, compute_dtype=jnp.bfloat16):
    """Hoisted (one-time) weight preparation: pad every feature (lane) dim to a
    multiple of 128 and cast the matmul weights to `compute_dtype` (bf16 by default;
    int8/fp8 could go further where accuracy allows).  BN gamma/beta and the output
    bias stay f32.  Padded gamma is 0 -> padded BN columns stay exactly 0, so the
    padding is semantics-preserving."""
    layers_p = []
    for (w, g, be) in params["layers"]:
        kp = _round_up(w.shape[0], LANE)
        np_ = _round_up(w.shape[1], LANE)
        layers_p.append((_pad2(w, kp, np_).astype(compute_dtype),
                         _pad2(g, 1, np_),
                         _pad2(be, 1, np_)))
    w_out, b_out = params["w_out"], params["b_out"]
    kp = _round_up(w_out.shape[0], LANE)
    np_ = _round_up(w_out.shape[1], LANE)
    return {"layers": layers_p,
            "w_out": _pad2(w_out, kp, np_).astype(compute_dtype),
            "b_out": _pad2(b_out, 1, np_)}


def _fused_footprint_bytes(x_p, layers_p, w_out_p, b_out_p):
    """Conservative VMEM footprint estimate for the grid-less fused call: all
    operands + unrolled-layer f32 intermediates + margin for Pallas buffering
    and compiler scratch."""
    arrays = [x_p, w_out_p, b_out_p] + [t for lay in layers_p for t in lay]
    n = sum(int(a.size) * a.dtype.itemsize for a in arrays)
    widths = [w.shape[1] for (w, _, _) in layers_p] + [w_out_p.shape[1]]
    b = x_p.shape[0]
    n += 6 * b * max(widths) * 4            # live f32 y/z/h of the unrolled layer loop
    n += b * w_out_p.shape[1] * 4           # f32 output buffer
    return int(n * 1.5)                     # Pallas buffering + compiler scratch margin


# --------------------------------------------------------------------------- forward
@functools.partial(jax.jit, static_argnames=("out_dim", "use_fused"))
def mlp_forward(x, params, out_dim, use_fused=None):
    """Forward pass.  `params` must come from prepare_params() (pre-padded, pre-cast).
    NOTE: if several MLP invocations happen per step, batch them along B before
    calling -- at B=8..16 the kernels are weight-HBM-bandwidth bound and throughput
    scales ~linearly with effective batch.  Do NOT pad the batch inside the kernel:
    BatchNorm statistics must span exactly the real batch."""
    layers = params["layers"]
    w_out, b_out = params["w_out"], params["b_out"]

    first_w = layers[0][0] if layers else w_out
    compute_dtype = first_w.dtype
    in_dim_p = first_w.shape[0]

    # Only the (small, per-call) input is padded at call time; weights are pre-padded.
    x_p = _pad2(x.astype(compute_dtype), x.shape[0], in_dim_p)

    if use_fused is None:
        weight_bytes = sum(int(w.size) * w.dtype.itemsize for (w, _, _) in layers)
        weight_bytes += int(w_out.size) * w_out.dtype.itemsize
        use_fused = _fused_footprint_bytes(x_p, layers, w_out, b_out) <= _FUSED_VMEM_BUDGET
        if _SMALL_VMEM_PART:
            # v7x-like part: the grid-less fused kernel runs on one TensorCore only,
            # so weight-dominated models go to the N-tiled "parallel" path (2 TCs).
            use_fused = use_fused and weight_bytes <= _FUSED_WEIGHT_CAP_SMALL_VMEM

    if use_fused:
        out_p = _fused_mlp(x_p, layers, w_out, b_out)
    else:
        h = x_p
        for (wp, gp, bp) in layers:
            h = _hidden_layer_tiled(h, wp, gp, bp)
        out_p = _out_layer_tiled(h, w_out, b_out)
    return out_p[:, :out_dim]


# --------------------------------------------------------------------------- reference
def mlp_forward_ref(x, params, compute_dtype=jnp.float32):
    """Pure-JAX reference on the ORIGINAL (unpadded, f32) params.  For bf16, emulates
    the kernel: matmul operands held in compute_dtype, accumulation in f32, BN /
    activation math in f32."""
    h = x.astype(compute_dtype)
    for (w, g, be) in params["layers"]:
        y = h.astype(jnp.float32) @ w.astype(compute_dtype).astype(jnp.float32)
        mean = jnp.mean(y, axis=0, keepdims=True)
        var = jnp.mean((y - mean) ** 2, axis=0, keepdims=True)
        scale = g * jax.lax.rsqrt(var + BN_EPS)
        z = y * scale + (be - mean * scale)
        h = jnp.maximum(z, LRELU_SLOPE * z).astype(compute_dtype)
    w_out = params["w_out"].astype(compute_dtype).astype(jnp.float32)
    return h.astype(jnp.float32) @ w_out + params["b_out"]


# --------------------------------------------------------------------------- demo
if __name__ == "__main__":
    key = jax.random.PRNGKey(0)

    # 1) Small MLP (module-spec scale), f32, fully fused single-kernel path.
    B, NI, NO, NH, NL = 8, 16, 8, 32, 2
    key, kx = jax.random.split(key)
    x = jax.random.normal(kx, (B, NI), jnp.float32)
    params = init_mlp_params(key, NI, NO, NH, NL)

    out = jax.block_until_ready(mlp_forward(x, prepare_params(params, jnp.float32), out_dim=NO))
    ref = mlp_forward_ref(x, params)
    assert out.shape == (B, NO)
    assert jnp.allclose(out, ref, atol=1e-4, rtol=1e-4), "fused f32 kernel mismatch vs reference"

    # 2) bf16 weights/activations (default prepare_params dtype) on the fused path.
    out_bf16 = jax.block_until_ready(mlp_forward(x, prepare_params(params), out_dim=NO))
    ref_bf16 = mlp_forward_ref(x, params, compute_dtype=jnp.bfloat16)
    assert out_bf16.shape == (B, NO)
    assert jnp.allclose(out_bf16, ref_bf16, atol=5e-2, rtol=5e-2), "fused bf16 kernel mismatch vs reference"

    # 3) Larger MLP forced through the gridded per-layer (tiled, double-buffered) path, f32.
    B2, NI2, NO2, NH2, NL2 = 16, 128, 128, 1024, 2
    key, kx2 = jax.random.split(key)
    x2 = jax.random.normal(kx2, (B2, NI2), jnp.float32)
    params2 = init_mlp_params(key, NI2, NO2, NH2, NL2)
    out2 = jax.block_until_ready(
        mlp_forward(x2, prepare_params(params2, jnp.float32), out_dim=NO2, use_fused=False))
    ref2 = mlp_forward_ref(x2, params2)
    assert out2.shape == (B2, NO2)
    assert jnp.allclose(out2, ref2, atol=1e-3, rtol=1e-3), "tiled f32 kernel mismatch vs reference"

    # 4) nlayers == 0 edge case (only the biased output Linear).
    params0 = init_mlp_params(jax.random.PRNGKey(1), NI, NO, NH, 0)
    out0 = jax.block_until_ready(mlp_forward(x, prepare_params(params0, jnp.float32), out_dim=NO))
    ref0 = mlp_forward_ref(x, params0)
    assert out0.shape == (B, NO)
    assert jnp.allclose(out0, ref0, atol=1e-4, rtol=1e-4), "nlayers=0 kernel mismatch vs reference"

    print("KERNEL_OK")
</pallas_src>

<mosaic_0001>
module attributes {stable_mosaic.version = 11 : i64} {
  func.func @kernel(%arg0: memref<8x128xf32, #tpu.memory_space<vmem>>, %arg1: memref<128x128xf32, #tpu.memory_space<vmem>>, %arg2: memref<1x128xf32, #tpu.memory_space<vmem>>, %arg3: memref<1x128xf32, #tpu.memory_space<vmem>>, %arg4: memref<128x128xf32, #tpu.memory_space<vmem>>, %arg5: memref<1x128xf32, #tpu.memory_space<vmem>>, %arg6: memref<1x128xf32, #tpu.memory_space<vmem>>, %arg7: memref<128x128xf32, #tpu.memory_space<vmem>>, %arg8: memref<1x128xf32, #tpu.memory_space<vmem>>, %arg9: memref<8x128xf32, #tpu.memory_space<vmem>>) attributes {dimension_semantics = [], scalar_prefetch = 0 : i64, scratch_operands = 0 : i64, tpu.core_type = #tpu.core_type<tc>} {
    %c0 = arith.constant 0 : index
    %c0_0 = arith.constant 0 : index
    %0 = vector.load %arg0[%c0, %c0_0] : memref<8x128xf32, #tpu.memory_space<vmem>>, vector<8x128xf32>
    %c0_1 = arith.constant 0 : index
    %c0_2 = arith.constant 0 : index
    %1 = vector.load %arg1[%c0_1, %c0_2] : memref<128x128xf32, #tpu.memory_space<vmem>>, vector<128x128xf32>
    %cst = arith.constant dense<0.000000e+00> : vector<8x128xf32>
    %2 = tpu.matmul %0, %1, %cst {dimension_numbers = #tpu.dot_dimension_numbers<[1], [0], [0], [1], [0, 0, 1, 1], [], []>} : vector<8x128xf32>, vector<128x128xf32>, vector<8x128xf32> -> vector<8x128xf32>
    %c0_3 = arith.constant 0 : index
    %c0_4 = arith.constant 0 : index
    %3 = vector.load %arg2[%c0_3, %c0_4] : memref<1x128xf32, #tpu.memory_space<vmem>>, vector<1x128xf32>
    %c0_5 = arith.constant 0 : index
    %c0_6 = arith.constant 0 : index
    %4 = vector.load %arg3[%c0_5, %c0_6] : memref<1x128xf32, #tpu.memory_space<vmem>>, vector<1x128xf32>
    %cst_7 = arith.constant dense<0.000000e+00> : vector<128xf32>
    %5 = vector.multi_reduction <add>, %2, %cst_7 [0] : vector<8x128xf32> to vector<128xf32>
    %6 = vector.shape_cast %5 : vector<128xf32> to vector<1x128xf32>
    %cst_8 = arith.constant 8.000000e+00 : f32
    %7 = vector.broadcast %cst_8 : f32 to vector<1x128xf32>
    %8 = arith.divf %6, %7 : vector<1x128xf32>
    %9 = vector.broadcast %8 : vector<1x128xf32> to vector<8x128xf32>
    %10 = arith.subf %2, %9 : vector<8x128xf32>
    %11 = arith.mulf %10, %10 : vector<8x128xf32>
    %cst_9 = arith.constant dense<0.000000e+00> : vector<128xf32>
    %12 = vector.multi_reduction <add>, %11, %cst_9 [0] : vector<8x128xf32> to vector<128xf32>
    %13 = vector.shape_cast %12 : vector<128xf32> to vector<1x128xf32>
    %cst_10 = arith.constant 8.000000e+00 : f32
    %14 = vector.broadcast %cst_10 : f32 to vector<1x128xf32>
    %15 = arith.divf %13, %14 : vector<1x128xf32>
    %cst_11 = arith.constant 9.99999974E-6 : f32
    %16 = vector.broadcast %cst_11 : f32 to vector<1x128xf32>
    %17 = arith.addf %15, %16 : vector<1x128xf32>
    %18 = math.rsqrt %17 : vector<1x128xf32>
    %19 = arith.mulf %3, %18 : vector<1x128xf32>
    %20 = arith.mulf %8, %19 : vector<1x128xf32>
    %21 = arith.subf %4, %20 : vector<1x128xf32>
    %22 = vector.broadcast %19 : vector<1x128xf32> to vector<8x128xf32>
    %23 = arith.mulf %2, %22 : vector<8x128xf32>
    %24 = vector.broadcast %21 : vector<1x128xf32> to vector<8x128xf32>
    %25 = arith.addf %23, %24 : vector<8x128xf32>
    %cst_12 = arith.constant 2.000000e-01 : f32
    %26 = vector.broadcast %cst_12 : f32 to vector<8x128xf32>
    %27 = arith.mulf %26, %25 : vector<8x128xf32>
    %28 = arith.maximumf %25, %27 : vector<8x128xf32>
    %c0_13 = arith.constant 0 : index
    %c0_14 = arith.constant 0 : index
    %29 = vector.load %arg4[%c0_13, %c0_14] : memref<128x128xf32, #tpu.memory_space<vmem>>, vector<128x128xf32>
    %cst_15 = arith.constant dense<0.000000e+00> : vector<8x128xf32>
    %30 = tpu.matmul %28, %29, %cst_15 {dimension_numbers = #tpu.dot_dimension_numbers<[1], [0], [0], [1], [0, 0, 1, 1], [], []>} : vector<8x128xf32>, vector<128x128xf32>, vector<8x128xf32> -> vector<8x128xf32>
    %c0_16 = arith.constant 0 : index
    %c0_17 = arith.constant 0 : index
    %31 = vector.load %arg5[%c0_16, %c0_17] : memref<1x128xf32, #tpu.memory_space<vmem>>, vector<1x128xf32>
    %c0_18 = arith.constant 0 : index
    %c0_19 = arith.constant 0 : index
    %32 = vector.load %arg6[%c0_18, %c0_19] : memref<1x128xf32, #tpu.memory_space<vmem>>, vector<1x128xf32>
    %cst_20 = arith.constant dense<0.000000e+00> : vector<128xf32>
    %33 = vector.multi_reduction <add>, %30, %cst_20 [0] : vector<8x128xf32> to vector<128xf32>
    %34 = vector.shape_cast %33 : vector<128xf32> to vector<1x128xf32>
    %cst_21 = arith.constant 8.000000e+00 : f32
    %35 = vector.broadcast %cst_21 : f32 to vector<1x128xf32>
    %36 = arith.divf %34, %35 : vector<1x128xf32>
    %37 = vector.broadcast %36 : vector<1x128xf32> to vector<8x128xf32>
    %38 = arith.subf %30, %37 : vector<8x128xf32>
    %39 = arith.mulf %38, %38 : vector<8x128xf32>
    %cst_22 = arith.constant dense<0.000000e+00> : vector<128xf32>
    %40 = vector.multi_reduction <add>, %39, %cst_22 [0] : vector<8x128xf32> to vector<128xf32>
    %41 = vector.shape_cast %40 : vector<128xf32> to vector<1x128xf32>
    %cst_23 = arith.constant 8.000000e+00 : f32
    %42 = vector.broadcast %cst_23 : f32 to vector<1x128xf32>
    %43 = arith.divf %41, %42 : vector<1x128xf32>
    %cst_24 = arith.constant 9.99999974E-6 : f32
    %44 = vector.broadcast %cst_24 : f32 to vector<1x128xf32>
    %45 = arith.addf %43, %44 : vector<1x128xf32>
    %46 = math.rsqrt %45 : vector<1x128xf32>
    %47 = arith.mulf %31, %46 : vector<1x128xf32>
    %48 = arith.mulf %36, %47 : vector<1x128xf32>
    %49 = arith.subf %32, %48 : vector<1x128xf32>
    %50 = vector.broadcast %47 : vector<1x128xf32> to vector<8x128xf32>
    %51 = arith.mulf %30, %50 : vector<8x128xf32>
    %52 = vector.broadcast %49 : vector<1x128xf32> to vector<8x128xf32>
    %53 = arith.addf %51, %52 : vector<8x128xf32>
    %cst_25 = arith.constant 2.000000e-01 : f32
    %54 = vector.broadcast %cst_25 : f32 to vector<8x128xf32>
    %55 = arith.mulf %54, %53 : vector<8x128xf32>
    %56 = arith.maximumf %53, %55 : vector<8x128xf32>
    %c0_26 = arith.constant 0 : index
    %c0_27 = arith.constant 0 : index
    %57 = vector.load %arg7[%c0_26, %c0_27] : memref<128x128xf32, #tpu.memory_space<vmem>>, vector<128x128xf32>
    %cst_28 = arith.constant dense<0.000000e+00> : vector<8x128xf32>
    %58 = tpu.matmul %56, %57, %cst_28 {dimension_numbers = #tpu.dot_dimension_numbers<[1], [0], [0], [1], [0, 0, 1, 1], [], []>} : vector<8x128xf32>, vector<128x128xf32>, vector<8x128xf32> -> vector<8x128xf32>
    %c0_29 = arith.constant 0 : index
    %c0_30 = arith.constant 0 : index
    %59 = vector.load %arg8[%c0_29, %c0_30] : memref<1x128xf32, #tpu.memory_space<vmem>>, vector<1x128xf32>
    %60 = vector.broadcast %59 : vector<1x128xf32> to vector<8x128xf32>
    %61 = arith.addf %58, %60 : vector<8x128xf32>
    %c0_31 = arith.constant 0 : index
    %c0_32 = arith.constant 0 : index
    %62 = vector.load %arg9[%c0_31, %c0_32] : memref<8x128xf32, #tpu.memory_space<vmem>>, vector<8x128xf32>
    tpu.vector_store %arg9[%c0_31, %c0_32], %61 {strides = array<i32>} : memref<8x128xf32, #tpu.memory_space<vmem>>, vector<8x128xf32>,
    return
  }
}

</mosaic_0001>

<bundles_post_ra>
// kernel: mlp_forward.1
= control target key start
LH: loop header
LB: loop body
LE: loop exit
PB: predicated region body
PF: predicated region fallthrough
CT: control target
= control target key end

     0   :  { %14 = vsyncpa [#allocation3], 0  ;;  %s839_s0 = inlined_call_operand.vmem [shape: f32[8,128], index: 0, kind: input, shape index: {}]   ;;  %s840_s1 = inlined_call_operand.hbm [shape: f32[128,128], index: 1, kind: input, shape index: {}]   ;;  %s841_s2 = inlined_call_operand.vmem [shape: f32[1,128], index: 2, kind: input, shape index: {}]   ;;  %s842_s3 = inlined_call_operand.vmem [shape: f32[1,128], index: 3, kind: input, shape index: {}]   ;;  %s843_s4 = inlined_call_operand.hbm [shape: f32[128,128], index: 4, kind: input, shape index: {}]   ;;  %s844_s5 = inlined_call_operand.vmem [shape: f32[1,128], index: 5, kind: input, shape index: {}]   ;;  %s845_s6 = inlined_call_operand.vmem [shape: f32[1,128], index: 6, kind: input, shape index: {}]   ;;  %s846_s7 = inlined_call_operand.hbm [shape: f32[128,128], index: 7, kind: input, shape index: {}]   ;;  %s847_s8 = inlined_call_operand.vmem [shape: f32[1,128], index: 8, kind: input, shape index: {}]   ;;  %s848_s9 = inlined_call_operand.hbm [shape: f32[8,128], index: 9, kind: output, shape index: {}]  }
   0x1   :  { %15 = vsyncpa [#allocation6], 0 }
   0x2   :  { %16 = vsyncpa [#allocation4], 0  ;;  %s691_s30 = smov [#allocation5]   ;;  %s692_s11 = smov [#allocation2]  }
   0x3   :  { %s40_s10 = sshll.u32 %s691_s30, 4  ;;  %s24_s12 = sshll.u32 %s692_s11, 4  ;;  %s41_s10 = int_to_ptr.vmem [resolvable:$true] %s40_s10  ;;  %s25_s12 = int_to_ptr.vmem [resolvable:$true] %s24_s12 }
   0x4   :  { %s613_s13 = scalar_lea.vmem %s41_s10, 2048  ;;  %p618_p1 = scmp.lt.s32.totalorder %s41_s10, %s41_s10 }
   0x5   :  { %p614_p0 = scmp.ne.s32.totalorder %s41_s10, %s613_s13  ;;  %p619_p2 = scmp.lt.s32.totalorder %s613_s13, %s613_s13 }
   0x7   :  { %p620_p3 = por %p619_p2, %p618_p1 }
   0x9   :  { %p621_p4 = pnand %p620_p3, %p614_p0 }
   0xb   :  { %624 = shalt.err (!%p621_p4)
}
   0xc   :  { %s693_s14 = smov 128   ;;  %s694_s15 = smov 8  }
   0xd   :  { %46 = dma.hbm_to_vmem [thread:$0]  %s843_s4, 2048, %s41_s10, [#allocation6], %s693_s14, %s693_s14, %s694_s15  }
   0xe   :  { %s633_s18 = scalar_lea.vmem %s25_s12, 2048  ;;  %p638_p6 = scmp.lt.s32.totalorder %s25_s12, %s25_s12 }
   0xf   :  { %p634_p5 = scmp.ne.s32.totalorder %s25_s12, %s633_s18  ;;  %p639_p7 = scmp.lt.s32.totalorder %s633_s18, %s633_s18 }
  0x11   :  { %p640_p8 = por %p639_p7, %p638_p6 }
  0x13   :  { %p641_p9 = pnand %p640_p8, %p634_p5 }
  0x15   :  { %644 = shalt.err (!%p641_p9)
}
  0x16   :  { %30 = dma.hbm_to_vmem [thread:$0]  %s840_s1, 2048, %s25_s12, [#allocation3], %s693_s14, %s693_s14, %s694_s15  }
  0x17   :  { %s695_s21 = smov [#allocation7]  }
  0x18   :  { %s56_s22 = sshll.u32 %s695_s21, 4  ;;  %s57_s22 = int_to_ptr.vmem [resolvable:$true] %s56_s22 }
  0x19   :  { %s653_s23 = scalar_lea.vmem %s57_s22, 2048  ;;  %p658_p11 = scmp.lt.s32.totalorder %s57_s22, %s57_s22 }
  0x1a   :  { %p654_p10 = scmp.ne.s32.totalorder %s57_s22, %s653_s23  ;;  %p659_p12 = scmp.lt.s32.totalorder %s653_s23, %s653_s23 }
  0x1c   :  { %p660_p13 = por %p659_p12, %p658_p11 }
  0x1e   :  { %p661_p0 = pnand %p660_p13, %p654_p10 }
  0x20   :  { %664 = shalt.err (!%p661_p0)
}
  0x21   :  { %62 = dma.hbm_to_vmem [thread:$0]  %s846_s7, 2048, %s57_s22, [#allocation6], %s693_s14, %s693_s14, %s694_s15  }
  0x22   :  { %685 = dma.done.wait [#allocation3], 2048  }
  0x23   :  { %686 = vsyncadd [#allocation3], 4294965248 }
  0x24   :  { %687 = dma.done.wait [#allocation6], 4096  }
  0x25   :  { %688 = vsyncadd [#allocation6], 4294963200  ;;  %v696_v0 = vmov 0.0   ;;  %vm697_vm0 = vmmov 0   ;;  %v90_v1 = vld [vmem:[#allocation2 + $0x78] sm:$0xff]  ;;  %v89_v2 = vld [vmem:[#allocation2 + $0x70] sm:$0xff]  ;;  %v186_v53 = vlaneseq }
  0x26   :  { %488 = vmatprep.subr.mxu0 %v696_v0  ;;  %520 = vmatprep.mubr.msk.f32.mxu0 %vm697_vm0, %v696_v0  ;;  %v88_v3 = vld [vmem:[#allocation2 + $0x68] sm:$0xff]  ;;  %v87_v4 = vld [vmem:[#allocation2 + $0x60] sm:$0xff]  ;;  %v86_v5 = vld [vmem:[#allocation2 + $0x58] sm:$0xff] }
  0x27   :  { %523 = vmatprep.subr.mxu1 %v696_v0  ;;  %555 = vmatprep.mubr.msk.f32.mxu1 %vm697_vm0, %v696_v0  ;;  %v85_v6 = vld [vmem:[#allocation2 + $0x50] sm:$0xff]  ;;  %v84_v7 = vld [vmem:[#allocation2 + $0x48] sm:$0xff]  ;;  %v83_v8 = vld [vmem:[#allocation2 + $0x40] sm:$0xff]  ;;  %v187_v54 = vshrl.u32 %v186_v53, 7 }
  0x28   :  { %489 = vmatpush3.msra.mxu0 %v90_v1  ;;  %v82_v9 = vld [vmem:[#allocation2 + $0x38] sm:$0xff]  ;;  %v81_v10 = vld [vmem:[#allocation2 + $0x30] sm:$0xff]  ;;  %v80_v11 = vld [vmem:[#allocation2 + $0x28] sm:$0xff] }
  0x29   :  { %490 = vmatprep.subr.mxu0 %v696_v0  ;;  %v79_v12 = vld [vmem:[#allocation2 + $0x20] sm:$0xff]  ;;  %v78_v13 = vld [vmem:[#allocation2 + $0x18] sm:$0xff]  ;;  %v77_v14 = vld [vmem:[#allocation2 + $0x10] sm:$0xff]  ;;  %v803_v56 = vsub.s32 0, %v187_v54 }
  0x2a   :  { %491 = vmatpush3.msra.mxu0 %v89_v2  ;;  %v76_v15 = vld [vmem:[#allocation2 + $0x8] sm:$0xff]  ;;  %v75_v16 = vld [vmem:[#allocation2] sm:$0xff]  ;;  %v216_v18 = vld [vmem:[#allocation5 + $0x78] sm:$0xff] }
  0x2b   :  { %492 = vmatprep.subr.mxu0 %v696_v0  ;;  %v74_v17 = vld [vmem:[%s839_s0] sm:$0xff]  ;;  %524 = vmatpush3.msra.mxu1 %v216_v18  ;;  %v215_v19 = vld [vmem:[#allocation5 + $0x70] sm:$0xff]  ;;  %v214_v20 = vld [vmem:[#allocation5 + $0x68] sm:$0xff] }
  0x2c   :  { %493 = vmatpush3.msra.mxu0 %v88_v3  ;;  %525 = vmatprep.subr.mxu1 %v696_v0  ;;  %v213_v21 = vld [vmem:[#allocation5 + $0x60] sm:$0xff]  ;;  %v212_v22 = vld [vmem:[#allocation5 + $0x58] sm:$0xff]  ;;  %v211_v23 = vld [vmem:[#allocation5 + $0x50] sm:$0xff] }
  0x2d   :  { %494 = vmatprep.subr.mxu0 %v696_v0  ;;  %526 = vmatpush3.msra.mxu1 %v215_v19  ;;  %v210_v24 = vld [vmem:[#allocation5 + $0x48] sm:$0xff]  ;;  %v209_v25 = vld [vmem:[#allocation5 + $0x40] sm:$0xff]  ;;  %v208_v26 = vld [vmem:[#allocation5 + $0x38] sm:$0xff] }
  0x2e   :  { %495 = vmatpush3.msra.mxu0 %v87_v4  ;;  %527 = vmatprep.subr.mxu1 %v696_v0  ;;  %v207_v27 = vld [vmem:[#allocation5 + $0x30] sm:$0xff]  ;;  %v206_v28 = vld [vmem:[#allocation5 + $0x28] sm:$0xff]  ;;  %v205_v29 = vld [vmem:[#allocation5 + $0x20] sm:$0xff] }
  0x2f   :  { %496 = vmatprep.subr.mxu0 %v696_v0  ;;  %528 = vmatpush3.msra.mxu1 %v214_v20  ;;  %v204_v30 = vld [vmem:[#allocation5 + $0x18] sm:$0xff]  ;;  %v203_v31 = vld [vmem:[#allocation5 + $0x10] sm:$0xff]  ;;  %v202_v32 = vld [vmem:[#allocation5 + $0x8] sm:$0xff] }
  0x30   :  { %497 = vmatpush3.msra.mxu0 %v86_v5  ;;  %529 = vmatprep.subr.mxu1 %v696_v0  ;;  %v201_v33 = vld [vmem:[#allocation5] sm:$0xff]  ;;  %v341_v5 = vld [vmem:[#allocation7 + $0x78] sm:$0xff]  ;;  %v328_v18 = vld [vmem:[#allocation7 + $0x10] sm:$0xff] }
  0x31   :  { %498 = vmatprep.subr.mxu0 %v696_v0  ;;  %530 = vmatpush3.msra.mxu1 %v213_v21  ;;  %v161_v55 = vld [vmem:[%s841_s2] sm:$0x1]  ;;  %v327_v19 = vld [vmem:[#allocation7 + $0x8] sm:$0xff] }
  0x32   :  { %499 = vmatpush3.msra.mxu0 %v85_v6  ;;  %531 = vmatprep.subr.mxu1 %v696_v0  ;;  %v162_v59 = vld [vmem:[%s842_s3] sm:$0x1]  ;;  %v340_v6 = vld [vmem:[#allocation7 + $0x70] sm:$0xff] }
  0x33   :  { %500 = vmatprep.subr.mxu0 %v696_v0  ;;  %532 = vmatpush3.msra.mxu1 %v212_v22  ;;  %v326_v20 = vld [vmem:[#allocation7] sm:$0xff] }
  0x34   :  { %501 = vmatpush3.msra.mxu0 %v84_v7  ;;  %533 = vmatprep.subr.mxu1 %v696_v0  ;;  %v339_v7 = vld [vmem:[#allocation7 + $0x68] sm:$0xff] }
  0x35   :  { %502 = vmatprep.subr.mxu0 %v696_v0  ;;  %534 = vmatpush3.msra.mxu1 %v211_v23 }
  0x36   :  { %503 = vmatpush3.msra.mxu0 %v83_v8  ;;  %535 = vmatprep.subr.mxu1 %v696_v0  ;;  %v338_v8 = vld [vmem:[#allocation7 + $0x60] sm:$0xff] }
  0x37   :  { %504 = vmatprep.subr.mxu0 %v696_v0  ;;  %536 = vmatpush3.msra.mxu1 %v210_v24 }
  0x38   :  { %505 = vmatpush3.msra.mxu0 %v82_v9  ;;  %537 = vmatprep.subr.mxu1 %v696_v0  ;;  %v337_v9 = vld [vmem:[#allocation7 + $0x58] sm:$0xff] }
  0x39   :  { %506 = vmatprep.subr.mxu0 %v696_v0  ;;  %538 = vmatpush3.msra.mxu1 %v209_v25 }
  0x3a   :  { %507 = vmatpush3.msra.mxu0 %v81_v10  ;;  %539 = vmatprep.subr.mxu1 %v696_v0  ;;  %v336_v10 = vld [vmem:[#allocation7 + $0x50] sm:$0xff] }
  0x3b   :  { %508 = vmatprep.subr.mxu0 %v696_v0  ;;  %540 = vmatpush3.msra.mxu1 %v208_v26 }
  0x3c   :  { %509 = vmatpush3.msra.mxu0 %v80_v11  ;;  %541 = vmatprep.subr.mxu1 %v696_v0  ;;  %v335_v11 = vld [vmem:[#allocation7 + $0x48] sm:$0xff] }
  0x3d   :  { %510 = vmatprep.subr.mxu0 %v696_v0  ;;  %542 = vmatpush3.msra.mxu1 %v207_v27 }
  0x3e   :  { %511 = vmatpush3.msra.mxu0 %v79_v12  ;;  %543 = vmatprep.subr.mxu1 %v696_v0  ;;  %v334_v12 = vld [vmem:[#allocation7 + $0x40] sm:$0xff] }
  0x3f   :  { %512 = vmatprep.subr.mxu0 %v696_v0  ;;  %544 = vmatpush3.msra.mxu1 %v206_v28 }
  0x40   :  { %513 = vmatpush3.msra.mxu0 %v78_v13  ;;  %545 = vmatprep.subr.mxu1 %v696_v0  ;;  %v333_v13 = vld [vmem:[#allocation7 + $0x38] sm:$0xff] }
  0x41   :  { %514 = vmatprep.subr.mxu0 %v696_v0  ;;  %546 = vmatpush3.msra.mxu1 %v205_v29 }
  0x42   :  { %515 = vmatpush3.msra.mxu0 %v77_v14  ;;  %547 = vmatprep.subr.mxu1 %v696_v0  ;;  %v332_v14 = vld [vmem:[#allocation7 + $0x30] sm:$0xff] }
  0x43   :  { %516 = vmatprep.subr.mxu0 %v696_v0  ;;  %548 = vmatpush3.msra.mxu1 %v204_v30 }
  0x44   :  { %517 = vmatpush3.msra.mxu0 %v76_v15  ;;  %549 = vmatprep.subr.mxu1 %v696_v0  ;;  %v331_v15 = vld [vmem:[#allocation7 + $0x28] sm:$0xff] }
  0x45   :  { %518 = vmatprep.subr.mxu0 %v696_v0  ;;  %550 = vmatpush3.msra.mxu1 %v203_v31 }
  0x46   :  { %519 = vmatpush3.msra.mxu0 %v75_v16  ;;  %551 = vmatprep.subr.mxu1 %v696_v0  ;;  %v330_v16 = vld [vmem:[#allocation7 + $0x20] sm:$0xff] }
  0x47   :  { %521 = vmatmul.mubr.f32.vlgmr.msra.gmra.mxu0 %v74_v17  ;;  %558 = vmatprep.subr.mxu0 %v696_v0  ;;  %v329_v17 = vld [vmem:[#allocation7 + $0x18] sm:$0xff] }
  0x48   :  { %590 = vmatprep.mubr.msk.f32.mxu0 %vm697_vm0, %v696_v0  ;;  %552 = vmatpush3.msra.mxu1 %v202_v32 }
  0x49   :  { %553 = vmatprep.subr.mxu1 %v696_v0  ;;  %559 = vmatpush3.msra.mxu0 %v341_v5 }
  0x4a   :  { %554 = vmatpush3.msra.mxu1 %v201_v33  ;;  %560 = vmatprep.subr.mxu0 %v696_v0 }
  0x4b   :  { %561 = vmatpush3.msra.mxu0 %v340_v6 }
  0x4c   :  { %562 = vmatprep.subr.mxu0 %v696_v0 }
  0x4d   :  { %563 = vmatpush3.msra.mxu0 %v339_v7 }
  0x4e   :  { %564 = vmatprep.subr.mxu0 %v696_v0 }
  0x4f   :  { %565 = vmatpush3.msra.mxu0 %v338_v8 }
  0x50   :  { %566 = vmatprep.subr.mxu0 %v696_v0 }
  0x51   :  { %567 = vmatpush3.msra.mxu0 %v337_v9 }
  0x52   :  { %568 = vmatprep.subr.mxu0 %v696_v0 }
  0x53   :  { %569 = vmatpush3.msra.mxu0 %v336_v10 }
  0x54   :  { %570 = vmatprep.subr.mxu0 %v696_v0 }
  0x55   :  { %571 = vmatpush3.msra.mxu0 %v335_v11 }
  0x56   :  { %572 = vmatprep.subr.mxu0 %v696_v0 }
  0x57   :  { %573 = vmatpush3.msra.mxu0 %v334_v12 }
  0x58   :  { %574 = vmatprep.subr.mxu0 %v696_v0 }
  0x59   :  { %575 = vmatpush3.msra.mxu0 %v333_v13 }
  0x5a   :  { %576 = vmatprep.subr.mxu0 %v696_v0 }
  0x5b   :  { %577 = vmatpush3.msra.mxu0 %v332_v14 }
  0x5c   :  { %578 = vmatprep.subr.mxu0 %v696_v0 }
  0x5d   :  { %579 = vmatpush3.msra.mxu0 %v331_v15 }
  0x5e   :  { %580 = vmatprep.subr.mxu0 %v696_v0 }
  0x5f   :  { %581 = vmatpush3.msra.mxu0 %v330_v16 }
  0x60   :  { %582 = vmatprep.subr.mxu0 %v696_v0 }
  0x61   :  { %583 = vmatpush3.msra.mxu0 %v329_v17 }
  0x62   :  { %584 = vmatprep.subr.mxu0 %v696_v0 }
  0x63   :  { %585 = vmatpush3.msra.mxu0 %v328_v18 }
  0x64   :  { %586 = vmatprep.subr.mxu0 %v696_v0 }
  0x65   :  { %587 = vmatpush3.msra.mxu0 %v327_v19 }
  0x66   :  { %588 = vmatprep.subr.mxu0 %v696_v0 }
  0x67   :  { %589 = vmatpush3.msra.mxu0 %v326_v20 }
 0x107   :  { %v157_v34 = vpop.f32.mrf.mxu0 }
 0x108   :  { %v163_v35 = vrot.slane %v157_v34, 4 }
 0x109   :  { %v522_v36 = vpop.f32.mrf.mxu0 }
 0x10a   :  { %v164_v37 = vadd.f32 %v163_v35, %v157_v34 }
 0x10c   :  { %v165_v38 = vrot.slane %v164_v37, 2 }
 0x10e   :  { %v166_v39 = vadd.f32 %v165_v38, %v164_v37 }
 0x110   :  { %v167_v40 = vrot.slane %v166_v39, 1 }
 0x112   :  { %v168_v41 = vadd.f32 %v167_v40, %v166_v39  ;;  %v287_v39 = vld [vmem:[%s844_s5] sm:$0x1]  ;;  %s698_s5 = smov [#allocation8]  }
 0x113   :  { %s426_s11 = sshll.u32 %s698_s5, 4  ;;  %s427_s11 = int_to_ptr.vmem [resolvable:$true] %s426_s11 }
 0x114   :  { %v170_v42 = vmul.f32 0.125, %v168_v41  ;;  %p670_p2 = scmp.lt.s32.totalorder %s427_s11, %s427_s11 }
 0x116   :  { %v171_v43 = vsub.f32 %v157_v34, %v170_v42 }
 0x118   :  { %v172_v44 = vmul.f32 %v171_v43, %v171_v43 }
 0x11a   :  { %v173_v45 = vrot.slane %v172_v44, 4 }
 0x11c   :  { %v174_v46 = vadd.f32 %v173_v45, %v172_v44 }
 0x11e   :  { %v175_v47 = vrot.slane %v174_v46, 2 }
 0x120   :  { %v176_v48 = vadd.f32 %v175_v47, %v174_v46 }
 0x122   :  { %v177_v49 = vrot.slane %v176_v48, 1 }
 0x124   :  { %v178_v50 = vadd.f32 %v177_v49, %v176_v48 }
 0x126   :  { %v179_v51 = vmul.f32 0.125, %v178_v50 }
 0x128   :  { %v180_v52 = vadd.f32 1e-05, %v179_v51  ;;  %v436_v51 = vld [vmem:[%s847_s8] ss:$0 sm:$0xff] }
 0x12a   :  { %601 = vrsqrt.f32 %v180_v52 }
 0x137   :  { %v602_v57 = vpop.eup %601 }
 0x138   :  { %v182_v58 = vmul.f32 %v602_v57, %v161_v55 }
 0x13a   :  { %v183_v60 = vmul.f32 %v182_v58, %v170_v42  ;;  %v189_v61 = vrot.slane %v182_v58, %v803_v56  ;;  %v288_v42 = vld [vmem:[%s845_s6] sm:$0x1]  ;;  %s665_s6 = scalar_lea.vmem %s427_s11, 128 }
 0x13b   :  { %p666_p1 = scmp.ne.s32.totalorder %s427_s11, %s665_s6  ;;  %p671_p3 = scmp.lt.s32.totalorder %s665_s6, %s665_s6 }
 0x13c   :  { %v184_v62 = vsub.f32 %v162_v59, %v183_v60  ;;  %v191_v63 = vmul.f32 %v189_v61, %v157_v34 }
 0x13d   :  { %p672_p4 = por %p671_p3, %p670_p2 }
 0x13e   :  { %v196_v1 = vrot.slane %v184_v62, %v803_v56 }
 0x13f   :  { %p673_p5 = pnand %p672_p4, %p666_p1 }
 0x140   :  { %v198_v2 = vadd.f32 %v196_v1, %v191_v63 }
 0x142   :  { %v199_v3 = vmul.f32 0.2, %v198_v2 }
 0x144   :  { %v200_v4 = vmax.f32 %v198_v2, %v199_v3 }
 0x146   :  { %556 = vmatmul.mubr.f32.vlgmr.msra.gmra.mxu1 %v200_v4 }
 0x206   :  { %v283_v21 = vpop.f32.mrf.mxu1 }
 0x207   :  { %v289_v22 = vrot.slane %v283_v21, 4 }
 0x208   :  { %v557_v23 = vpop.f32.mrf.mxu1 }
 0x209   :  { %v290_v24 = vadd.f32 %v289_v22, %v283_v21 }
 0x20b   :  { %v291_v25 = vrot.slane %v290_v24, 2 }
 0x20d   :  { %v292_v26 = vadd.f32 %v291_v25, %v290_v24 }
 0x20f   :  { %v293_v27 = vrot.slane %v292_v26, 1 }
 0x211   :  { %v294_v28 = vadd.f32 %v293_v27, %v292_v26 }
 0x213   :  { %v295_v29 = vmul.f32 0.125, %v294_v28 }
 0x215   :  { %v296_v30 = vsub.f32 %v283_v21, %v295_v29 }
 0x217   :  { %v297_v31 = vmul.f32 %v296_v30, %v296_v30 }
 0x219   :  { %v298_v32 = vrot.slane %v297_v31, 4 }
 0x21b   :  { %v299_v33 = vadd.f32 %v298_v32, %v297_v31 }
 0x21d   :  { %v300_v34 = vrot.slane %v299_v33, 2 }
 0x21f   :  { %v301_v35 = vadd.f32 %v300_v34, %v299_v33 }
 0x221   :  { %v302_v36 = vrot.slane %v301_v35, 1 }
 0x223   :  { %v303_v37 = vadd.f32 %v302_v36, %v301_v35 }
 0x225   :  { %v304_v38 = vmul.f32 0.125, %v303_v37 }
 0x227   :  { %v305_v0 = vadd.f32 1e-05, %v304_v38 }
 0x229   :  { %603 = vrsqrt.f32 %v305_v0 }
 0x236   :  { %v604_v40 = vpop.eup %603 }
 0x237   :  { %v307_v41 = vmul.f32 %v604_v40, %v287_v39 }
 0x239   :  { %v308_v43 = vmul.f32 %v307_v41, %v295_v29  ;;  %v314_v44 = vrot.slane %v307_v41, %v803_v56 }
 0x23b   :  { %v309_v45 = vsub.f32 %v288_v42, %v308_v43  ;;  %v316_v46 = vmul.f32 %v314_v44, %v283_v21 }
 0x23d   :  { %v321_v47 = vrot.slane %v309_v45, %v803_v56 }
 0x23f   :  { %v323_v48 = vadd.f32 %v321_v47, %v316_v46 }
 0x241   :  { %v324_v49 = vmul.f32 0.2, %v323_v48 }
 0x243   :  { %v325_v50 = vmax.f32 %v323_v48, %v324_v49 }
 0x245   :  { %591 = vmatmul.mubr.f32.vlgmr.msra.gmra.mxu0 %v325_v50 }
 0x305   :  { %v415_v52 = vpop.f32.mrf.mxu0 }
 0x306   :  { %v416_v53 = vadd.f32 %v436_v51, %v415_v52 }
 0x307   :  { %v592_v54 = vpop.f32.mrf.mxu0 }
 0x308   :  { %419 = vst [vmem:[#allocation8] sm:$0xff] %v416_v53 }
 0x309   :  { %676 = shalt.err (!%p673_p5)
}
 0x30a   :  { %429 = dma.vmem_to_hbm [thread:$0]  %s427_s11, 128, %s848_s9, [#allocation4]  }
 0x30b   :  { %689 = dma.done.wait [#allocation4], 128  }
 0x30c   :  { %690 = vsyncadd [#allocation4], 4294967168 }
 0x30d   :  { %433 = vsyncpa [#allocation3], 1 }
 0x30e   :  { %434 = vsyncpa [#allocation6], 1 }
 0x30f   :  { %435 = vsyncpa [#allocation4], 1 }

</bundles_post_ra>
